<compile_context>
chip_gen: v7x
topology: tpu7x:2x2x1
jax: 0.10.0
libtpu: 0.0.40
codegen_flags: <defaults>
</compile_context>

<pallas_src>
import jax
import jax.numpy as jnp
from jax.experimental import pallas as pl
from jax.experimental.pallas import tpu as pltpu


def actor_critic_kernel(x_ref, w1_ref, b1_ref, w2_ref, b2_ref, out_ref):
    x = x_ref[...]

    # fused layer 1: [h_c | h_a] = relu(x @ [W1c | W1a] + [b1c | b1a])
    h = jnp.dot(x, w1_ref[...], preferred_element_type=jnp.float32) + b1_ref[...]
    h = jnp.maximum(h, 0.0)

    # fused layer 2 (block-diagonal): [value | logits] = h @ [[W2c,0],[0,W2a]] + [b2c | b2a]
    yz = jnp.dot(h, w2_ref[...], preferred_element_type=jnp.float32) + b2_ref[...]
    value = yz[:, :1]
    logits = yz[:, 1:]

    # numerically-stable softmax over the num_actions columns (exact divide for accuracy)
    m = jnp.max(logits, axis=-1, keepdims=True)
    e = jnp.exp(logits - m)
    probs = e / jnp.sum(e, axis=-1, keepdims=True)

    out_ref[...] = jnp.concatenate([value, probs], axis=-1).astype(out_ref.dtype)


def _round_up(n, m):
    return (n + m - 1) // m * m


def pack_params(params):
    """Pack the 8 PyTorch-style linear params into 4 fused arrays."""
    w1c, b1c, w2c, b2c = params["w1c"], params["b1c"], params["w2c"], params["b2c"]
    w1a, b1a, w2a, b2a = params["w1a"], params["b1a"], params["w2a"], params["b2a"]
    hidden = w1c.shape[1]
    num_actions = w2a.shape[1]
    W1 = jnp.concatenate([w1c, w1a], axis=1)                      # (F, 2H)
    B1 = jnp.concatenate([b1c, b1a], axis=1)                      # (1, 2H)
    W2 = jnp.concatenate(
        [jnp.concatenate([w2c, jnp.zeros((hidden, num_actions), w2c.dtype)], axis=1),
         jnp.concatenate([jnp.zeros((hidden, 1), w2a.dtype), w2a], axis=1)],
        axis=0)                                                   # (2H, 1+A)
    B2 = jnp.concatenate([b2c, b2a], axis=1)                      # (1, 1+A)
    return W1, B1, W2, B2


def actor_critic_forward(x, params, *, block_batch=512):
    """x: (B, num_inputs) float32. Returns (probs (B, A), value (B, 1))."""
    B, F = x.shape
    hidden = params["w1c"].shape[1]
    num_actions = params["w2a"].shape[1]

    W1, B1, W2, B2 = pack_params(params)
    H2 = 2 * hidden
    NO = 1 + num_actions

    # batch tiling: block second-to-last dim must be a multiple of 8
    TB = min(block_batch, _round_up(B, 8))
    Bp = _round_up(B, TB)
    if Bp != B:
        x = jnp.pad(x, ((0, Bp - B), (0, 0)))

    out = pl.pallas_call(
        actor_critic_kernel,
        out_shape=jax.ShapeDtypeStruct((Bp, NO), jnp.float32),
        grid=(Bp // TB,),
        in_specs=[
            pl.BlockSpec((TB, F), lambda i: (i, 0)),      # x tile (pipelined over batch)
            pl.BlockSpec((F, H2), lambda i: (0, 0)),      # fused W1   (resident)
            pl.BlockSpec((1, H2), lambda i: (0, 0)),      # fused b1   (resident)
            pl.BlockSpec((H2, NO), lambda i: (0, 0)),     # block-diag W2 (resident)
            pl.BlockSpec((1, NO), lambda i: (0, 0)),      # fused b2   (resident)
        ],
        out_specs=pl.BlockSpec((TB, NO), lambda i: (i, 0)),
        compiler_params=pltpu.CompilerParams(
            dimension_semantics=("parallel",)),
    )(x, W1, B1, W2, B2)

    out = out[:B]
    return out[:, 1:], out[:, :1]   # (probs, value)


def init_params(key, num_inputs, num_actions, hidden_size):
    """PyTorch nn.Linear default init (U[-1/sqrt(fan_in), 1/sqrt(fan_in)]).
    Weights stored as (in_features, out_features); biases as (1, out_features)."""
    def linear(k, fan_in, fan_out):
        kw, kb = jax.random.split(k)
        bound = 1.0 / jnp.sqrt(jnp.float32(fan_in))
        w = jax.random.uniform(kw, (fan_in, fan_out), jnp.float32, -bound, bound)
        b = jax.random.uniform(kb, (1, fan_out), jnp.float32, -bound, bound)
        return w, b

    k1, k2, k3, k4 = jax.random.split(key, 4)
    w1c, b1c = linear(k1, num_inputs, hidden_size)
    w2c, b2c = linear(k2, hidden_size, 1)
    w1a, b1a = linear(k3, num_inputs, hidden_size)
    w2a, b2a = linear(k4, hidden_size, num_actions)
    return dict(w1c=w1c, b1c=b1c, w2c=w2c, b2c=b2c,
                w1a=w1a, b1a=b1a, w2a=w2a, b2a=b2a)


def reference_forward(x, p):
    h_c = jnp.maximum(x @ p["w1c"] + p["b1c"], 0.0)
    value = h_c @ p["w2c"] + p["b2c"]
    h_a = jnp.maximum(x @ p["w1a"] + p["b1a"], 0.0)
    logits = h_a @ p["w2a"] + p["b2a"]
    probs = jax.nn.softmax(logits, axis=-1)
    return probs, value


if __name__ == "__main__":
    # CartPole-v0: observation dim = 4, action dim = 2; hidden_size = 256 as in the module.
    num_inputs, num_actions, hidden_size = 4, 2, 256
    batch = 8

    key = jax.random.PRNGKey(0)
    k_params, k_x = jax.random.split(key)
    params = init_params(k_params, num_inputs, num_actions, hidden_size)
    x = jax.random.normal(k_x, (batch, num_inputs), jnp.float32)

    probs, value = actor_critic_forward(x, params)
    probs, value = jax.block_until_ready((probs, value))

    # sanity check against pure-JAX reference
    probs_ref, value_ref = reference_forward(x, params)
    assert probs.shape == (batch, num_actions)
    assert value.shape == (batch, 1)
    assert jnp.allclose(value, value_ref, atol=1e-5, rtol=1e-5)
    assert jnp.allclose(probs, probs_ref, atol=1e-5, rtol=1e-5)
    assert jnp.allclose(jnp.sum(probs, axis=-1), 1.0, atol=1e-5)

    print("KERNEL_OK")
</pallas_src>

<mosaic_0001>
module attributes {stable_mosaic.version = 11 : i64} {
  func.func @actor_critic_kernel(%arg0: i32, %arg1: memref<8x4xf32, #tpu.memory_space<vmem>>, %arg2: memref<4x512xf32, #tpu.memory_space<vmem>>, %arg3: memref<1x512xf32, #tpu.memory_space<vmem>>, %arg4: memref<512x3xf32, #tpu.memory_space<vmem>>, %arg5: memref<1x3xf32, #tpu.memory_space<vmem>>, %arg6: memref<8x3xf32, #tpu.memory_space<vmem>>) attributes {dimension_semantics = [#tpu.dimension_semantics<parallel>], iteration_bounds = array<i64: 1>, scalar_prefetch = 0 : i64, scratch_operands = 0 : i64, tpu.core_type = #tpu.core_type<tc>, window_params = [{transform_indices = @transform_0, window_bounds = array<i64: 8, 4>}, {pipeline_mode = #tpu.pipeline_mode<synchronous>, transform_indices = @transform_1, window_bounds = array<i64: 4, 512>}, {pipeline_mode = #tpu.pipeline_mode<synchronous>, transform_indices = @transform_2, window_bounds = array<i64: 1, 512>}, {pipeline_mode = #tpu.pipeline_mode<synchronous>, transform_indices = @transform_3, window_bounds = array<i64: 512, 3>}, {pipeline_mode = #tpu.pipeline_mode<synchronous>, transform_indices = @transform_4, window_bounds = array<i64: 1, 3>}, {transform_indices = @transform_5, window_bounds = array<i64: 8, 3>}]} {
    %c0 = arith.constant 0 : index
    %c0_0 = arith.constant 0 : index
    %0 = vector.load %arg1[%c0, %c0_0] : memref<8x4xf32, #tpu.memory_space<vmem>>, vector<8x4xf32>
    %c0_1 = arith.constant 0 : index
    %c0_2 = arith.constant 0 : index
    %1 = vector.load %arg2[%c0_1, %c0_2] : memref<4x512xf32, #tpu.memory_space<vmem>>, vector<4x512xf32>
    %cst = arith.constant dense<0.000000e+00> : vector<8x512xf32>
    %2 = tpu.matmul %0, %1, %cst {dimension_numbers = #tpu.dot_dimension_numbers<[1], [0], [0], [1], [0, 0, 1, 1], [], []>} : vector<8x4xf32>, vector<4x512xf32>, vector<8x512xf32> -> vector<8x512xf32>
    %c0_3 = arith.constant 0 : index
    %c0_4 = arith.constant 0 : index
    %3 = vector.load %arg3[%c0_3, %c0_4] : memref<1x512xf32, #tpu.memory_space<vmem>>, vector<1x512xf32>
    %4 = vector.broadcast %3 : vector<1x512xf32> to vector<8x512xf32>
    %5 = arith.addf %2, %4 : vector<8x512xf32>
    %cst_5 = arith.constant 0.000000e+00 : f32
    %6 = vector.broadcast %cst_5 : f32 to vector<8x512xf32>
    %7 = arith.maximumf %5, %6 : vector<8x512xf32>
    %c0_6 = arith.constant 0 : index
    %c0_7 = arith.constant 0 : index
    %8 = vector.load %arg4[%c0_6, %c0_7] : memref<512x3xf32, #tpu.memory_space<vmem>>, vector<512x3xf32>
    %cst_8 = arith.constant dense<0.000000e+00> : vector<8x3xf32>
    %9 = tpu.matmul %7, %8, %cst_8 {dimension_numbers = #tpu.dot_dimension_numbers<[1], [0], [0], [1], [0, 0, 1, 1], [], []>} : vector<8x512xf32>, vector<512x3xf32>, vector<8x3xf32> -> vector<8x3xf32>
    %c0_9 = arith.constant 0 : index
    %c0_10 = arith.constant 0 : index
    %10 = vector.load %arg5[%c0_9, %c0_10] : memref<1x3xf32, #tpu.memory_space<vmem>>, vector<1x3xf32>
    %11 = vector.broadcast %10 : vector<1x3xf32> to vector<8x3xf32>
    %12 = arith.addf %9, %11 : vector<8x3xf32>
    %13 = vector.extract_strided_slice %12 {offsets = [0, 0], sizes = [8, 1], strides = [1, 1]} : vector<8x3xf32> to vector<8x1xf32>
    %14 = vector.extract_strided_slice %12 {offsets = [0, 1], sizes = [8, 2], strides = [1, 1]} : vector<8x3xf32> to vector<8x2xf32>
    %cst_11 = arith.constant dense<0xFF800000> : vector<8xf32>
    %15 = vector.multi_reduction <maximumf>, %14, %cst_11 [1] : vector<8x2xf32> to vector<8xf32>
    %16 = vector.shape_cast %15 : vector<8xf32> to vector<8x1xf32>
    %17 = vector.broadcast %16 : vector<8x1xf32> to vector<8x2xf32>
    %18 = arith.subf %14, %17 : vector<8x2xf32>
    %19 = math.exp %18 : vector<8x2xf32>
    %cst_12 = arith.constant dense<0.000000e+00> : vector<8xf32>
    %20 = vector.multi_reduction <add>, %19, %cst_12 [1] : vector<8x2xf32> to vector<8xf32>
    %21 = vector.shape_cast %20 : vector<8xf32> to vector<8x1xf32>
    %22 = vector.broadcast %21 : vector<8x1xf32> to vector<8x2xf32>
    %23 = arith.divf %19, %22 : vector<8x2xf32>
    %24 = tpu.concatenate %13, %23 in 1 : vector<8x1xf32>, vector<8x2xf32> -> vector<8x3xf32>
    %c0_13 = arith.constant 0 : index
    %c0_14 = arith.constant 0 : index
    %25 = vector.load %arg6[%c0_13, %c0_14] : memref<8x3xf32, #tpu.memory_space<vmem>>, vector<8x3xf32>
    tpu.vector_store %arg6[%c0_13, %c0_14], %24 {strides = array<i32>} : memref<8x3xf32, #tpu.memory_space<vmem>>, vector<8x3xf32>,
    return
  }
  func.func @transform_0(%arg0: i32) -> (i32, i32) {
    %c0_i32 = arith.constant 0 : i32
    %c0_i32_0 = arith.constant 0 : i32
    return %arg0, %c0_i32 : i32, i32
  }
  func.func @transform_1(%arg0: i32) -> (i32, i32) {
    %c0_i32 = arith.constant 0 : i32
    %c0_i32_0 = arith.constant 0 : i32
    %c0_i32_1 = arith.constant 0 : i32
    return %c0_i32, %c0_i32_0 : i32, i32
  }
  func.func @transform_2(%arg0: i32) -> (i32, i32) {
    %c0_i32 = arith.constant 0 : i32
    %c0_i32_0 = arith.constant 0 : i32
    %c0_i32_1 = arith.constant 0 : i32
    return %c0_i32, %c0_i32_0 : i32, i32
  }
  func.func @transform_3(%arg0: i32) -> (i32, i32) {
    %c0_i32 = arith.constant 0 : i32
    %c0_i32_0 = arith.constant 0 : i32
    %c0_i32_1 = arith.constant 0 : i32
    return %c0_i32, %c0_i32_0 : i32, i32
  }
  func.func @transform_4(%arg0: i32) -> (i32, i32) {
    %c0_i32 = arith.constant 0 : i32
    %c0_i32_0 = arith.constant 0 : i32
    %c0_i32_1 = arith.constant 0 : i32
    return %c0_i32, %c0_i32_0 : i32, i32
  }
  func.func @transform_5(%arg0: i32) -> (i32, i32) {
    %c0_i32 = arith.constant 0 : i32
    %c0_i32_0 = arith.constant 0 : i32
    return %arg0, %c0_i32 : i32, i32
  }
}

</mosaic_0001>

<bundles_post_ra>
// kernel: tpu_custom_call.1
= control target key start
LH: loop header
LB: loop body
LE: loop exit
PB: predicated region body
PF: predicated region fallthrough
CT: control target
= control target key end

     0   :  { %vm53_vm0 = vcmask 1043456   ;;  %v593_v2 = vmov 0.0   ;;  %vm49_vm1 = vcmask 31744   ;;  %vm419_vm2 = vcmask 23560   ;;  %s594_s19 = smov 127   ;;  %s841_s1 = inlined_call_operand.vmem [shape: f32[4,512], index: 1, kind: input, shape index: {}]   ;;  %s842_s0 = inlined_call_operand.vmem [shape: f32[8,4], index: 0, kind: input, shape index: {}]   ;;  %s843_s3 = inlined_call_operand.vmem [shape: f32[512,3], index: 3, kind: input, shape index: {}]   ;;  %s844_s2 = inlined_call_operand.vmem [shape: f32[1,512], index: 2, kind: input, shape index: {}]   ;;  %s845_s4 = inlined_call_operand.vmem [shape: f32[1,3], index: 4, kind: input, shape index: {}]   ;;  %s846_s5 = inlined_call_operand.vmem [shape: f32[8,3], index: 5, kind: output, shape index: {}]  }
   0x1   :  { %v21_v0 = vld [vmem:[%s841_s1] sm:$0xff]  ;;  %v22_v1 = vld [vmem:[%s841_s1 + $0x8] sm:$0xff]  ;;  %126 = vmatprep.mubr.f32.mxu0 %v593_v2  ;;  %197 = vmatprep.mubr.f32.mxu1 %v593_v2  ;;  %v226_v17 = vld [vmem:[%s843_s3 + $0x90] sm:$0xff]  ;;  %vm430_vm3 = vcmask 15360   ;;  %vm436_vm4 = vcmask 7168   ;;  %vm438_vm5 = vcmask 23552  }
   0x2   :  { %v20_v3 = vld [vmem:[%s842_s0] sm:$0xff]  ;;  %v47_v4 = vcombine.high %v21_v0, %v21_v0  ;;  %v48_v5 = vcombine.high %v22_v1, %v22_v1  ;;  %v225_v7 = vld [vmem:[%s843_s3 + $0x88] sm:$0xff]  ;;  %v227_v19 = vld [vmem:[%s843_s3 + $0x98] sm:$0xff] }
   0x3   :  { %v224_v6 = vld [vmem:[%s843_s3 + $0x80] sm:$0xff]  ;;  %v257_v10 = vld [vmem:[%s843_s3 + $0x188] sm:$0xff]  ;;  %v258_v20 = vld [vmem:[%s843_s3 + $0x190] sm:$0xff]  ;;  %v525_v22 = vpack.c.bf16 %v227_v19, %v226_v17 }
   0x4   :  { %v256_v8 = vld [vmem:[%s843_s3 + $0x180] sm:$0xff]  ;;  %v521_v9 = vpack.c.bf16 %v225_v7, %v224_v6  ;;  %v209_v12 = vld [vmem:[%s843_s3 + $0x8] sm:$0xff]  ;;  %444 = vmatprep.subr.msk.mxu0 %vm53_vm0, %v47_v4  ;;  %447 = vmatprep.subr.msk.mxu1 %vm53_vm0, %v48_v5  ;;  %v259_v21 = vld [vmem:[%s843_s3 + $0x198] sm:$0xff] }
   0x5   :  { %v208_v11 = vld [vmem:[%s843_s3] sm:$0xff]  ;;  %v553_v13 = vpack.c.bf16 %v257_v10, %v256_v8  ;;  %v241_v16 = vld [vmem:[%s843_s3 + $0x108] sm:$0xff]  ;;  %445 = vmatpush1.msk.msra.mxu0 %vm53_vm0, %v21_v0  ;;  %448 = vmatpush1.msk.msra.mxu1 %vm53_vm0, %v22_v1  ;;  %v557_v23 = vpack.c.bf16 %v259_v21, %v258_v20  ;;  %v210_v24 = vld [vmem:[%s843_s3 + $0x10] sm:$0xff] }
   0x6   :  { %v523_v14 = vpack.c.bf16 %v209_v12, %v208_v11  ;;  %v240_v15 = vld [vmem:[%s843_s3 + $0x100] sm:$0xff]  ;;  %446 = vmatmul.mubr.msk.f32.vlgmr.msra.gmra.mrb[0].mxu0 %vm49_vm1, %v20_v3  ;;  %449 = vmatmul.mubr.msk.f32.vlgmr.msra.gmra.mrb[0].mxu1 %vm49_vm1, %v20_v3  ;;  %v211_v25 = vld [vmem:[%s843_s3 + $0x18] sm:$0xff]  ;;  %v242_v26 = vld [vmem:[%s843_s3 + $0x110] sm:$0xff] }
   0x7   :  { %v555_v18 = vpack.c.bf16 %v241_v16, %v240_v15  ;;  %522 = vmatprep.subr.bf16.mxu0 %v521_v9  ;;  %554 = vmatprep.subr.bf16.mxu1 %v553_v13  ;;  %v243_v27 = vld [vmem:[%s843_s3 + $0x118] sm:$0xff]  ;;  %v228_v28 = vld [vmem:[%s843_s3 + $0xa0] sm:$0xff]  ;;  %v229_v29 = vld [vmem:[%s843_s3 + $0xa8] sm:$0xff]  ;;  %v527_v30 = vpack.c.bf16 %v211_v25, %v210_v24 }
   0x8   :  { %524 = vmatpush3.bf16.msra.mxu0 %v523_v14  ;;  %v559_v31 = vpack.c.bf16 %v243_v27, %v242_v26  ;;  %v260_v32 = vld [vmem:[%s843_s3 + $0x1a0] sm:$0xff]  ;;  %v261_v33 = vld [vmem:[%s843_s3 + $0x1a8] sm:$0xff]  ;;  %v529_v35 = vpack.c.bf16 %v229_v29, %v228_v28  ;;  %v230_v40 = vld [vmem:[%s843_s3 + $0xb0] sm:$0xff] }
   0x9   :  { %556 = vmatpush3.bf16.msra.mxu1 %v555_v18  ;;  %v212_v34 = vld [vmem:[%s843_s3 + $0x20] sm:$0xff]  ;;  %526 = vmatprep.subr.bf16.mxu0 %v525_v22  ;;  %v561_v36 = vpack.c.bf16 %v261_v33, %v260_v32  ;;  %v213_v37 = vld [vmem:[%s843_s3 + $0x28] sm:$0xff]  ;;  %v231_v41 = vld [vmem:[%s843_s3 + $0xb8] sm:$0xff] }
   0xa   :  { %558 = vmatprep.subr.bf16.mxu1 %v557_v23  ;;  %v244_v38 = vld [vmem:[%s843_s3 + $0x120] sm:$0xff]  ;;  %v245_v39 = vld [vmem:[%s843_s3 + $0x128] sm:$0xff]  ;;  %v262_v42 = vld [vmem:[%s843_s3 + $0x1b0] sm:$0xff]  ;;  %v531_v44 = vpack.c.bf16 %v213_v37, %v212_v34  ;;  %v533_v48 = vpack.c.bf16 %v231_v41, %v230_v40 }
   0xb   :  { %v263_v43 = vld [vmem:[%s843_s3 + $0x1b8] sm:$0xff]  ;;  %v563_v45 = vpack.c.bf16 %v245_v39, %v244_v38  ;;  %v214_v46 = vld [vmem:[%s843_s3 + $0x30] sm:$0xff]  ;;  %v232_v52 = vld [vmem:[%s843_s3 + $0xc0] sm:$0xff]  ;;  %v25_v38 = vlaneseq }
   0xc   :  { %528 = vmatpush3.bf16.msra.mxu0 %v527_v30  ;;  %v215_v47 = vld [vmem:[%s843_s3 + $0x38] sm:$0xff]  ;;  %v565_v49 = vpack.c.bf16 %v263_v43, %v262_v42  ;;  %v246_v50 = vld [vmem:[%s843_s3 + $0x130] sm:$0xff]  ;;  %v233_v53 = vld [vmem:[%s843_s3 + $0xc8] sm:$0xff] }
   0xd   :  { %560 = vmatpush3.bf16.msra.mxu1 %v559_v31  ;;  %530 = vmatprep.subr.bf16.mxu0 %v529_v35  ;;  %v247_v51 = vld [vmem:[%s843_s3 + $0x138] sm:$0xff]  ;;  %v264_v54 = vld [vmem:[%s843_s3 + $0x1c0] sm:$0xff]  ;;  %v265_v55 = vld [vmem:[%s843_s3 + $0x1c8] sm:$0xff]  ;;  %v535_v56 = vpack.c.bf16 %v215_v47, %v214_v46  ;;  %v537_v60 = vpack.c.bf16 %v233_v53, %v232_v52  ;;  %v26_v39 = vshrl.u32 %v25_v38, 7 }
   0xe   :  { %562 = vmatprep.subr.bf16.mxu1 %v561_v36  ;;  %v567_v57 = vpack.c.bf16 %v247_v51, %v246_v50  ;;  %v216_v58 = vld [vmem:[%s843_s3 + $0x40] sm:$0xff]  ;;  %v217_v59 = vld [vmem:[%s843_s3 + $0x48] sm:$0xff]  ;;  %v569_v61 = vpack.c.bf16 %v265_v55, %v264_v54  ;;  %v234_v0 = vld [vmem:[%s843_s3 + $0xd0] sm:$0xff] }
   0xf   :  { %v248_v62 = vld [vmem:[%s843_s3 + $0x140] sm:$0xff]  ;;  %v249_v63 = vld [vmem:[%s843_s3 + $0x148] sm:$0xff]  ;;  %v235_v1 = vld [vmem:[%s843_s3 + $0xd8] sm:$0xff]  ;;  %v539_v4 = vpack.c.bf16 %v217_v59, %v216_v58  ;;  %v27_v40 = vsub.s32 0, %v26_v39  ;;  %v35_v41 = vsub.s32 2, %v26_v39  ;;  %v31_v43 = vsub.s32 1, %v26_v39 }
  0x10   :  { %532 = vmatpush3.bf16.msra.mxu0 %v531_v44  ;;  %v266_v2 = vld [vmem:[%s843_s3 + $0x1d0] sm:$0xff]  ;;  %v267_v3 = vld [vmem:[%s843_s3 + $0x1d8] sm:$0xff]  ;;  %v571_v5 = vpack.c.bf16 %v249_v63, %v248_v62  ;;  %v541_v8 = vpack.c.bf16 %v235_v1, %v234_v0  ;;  %v236_v12 = vld [vmem:[%s843_s3 + $0xe0] sm:$0xff]  ;;  %v39_v44 = vsub.s32 3, %v26_v39 }
  0x11   :  { %564 = vmatpush3.bf16.msra.mxu1 %v563_v45  ;;  %534 = vmatprep.subr.bf16.mxu0 %v533_v48  ;;  %v218_v6 = vld [vmem:[%s843_s3 + $0x50] sm:$0xff]  ;;  %v219_v7 = vld [vmem:[%s843_s3 + $0x58] sm:$0xff]  ;;  %v573_v9 = vpack.c.bf16 %v267_v3, %v266_v2  ;;  %v237_v13 = vld [vmem:[%s843_s3 + $0xe8] sm:$0xff] }
  0x12   :  { %566 = vmatprep.subr.bf16.mxu1 %v565_v49  ;;  %v250_v10 = vld [vmem:[%s843_s3 + $0x150] sm:$0xff]  ;;  %v251_v11 = vld [vmem:[%s843_s3 + $0x158] sm:$0xff]  ;;  %v268_v14 = vld [vmem:[%s843_s3 + $0x1e0] sm:$0xff]  ;;  %v543_v16 = vpack.c.bf16 %v219_v7, %v218_v6  ;;  %v545_v18 = vpack.c.bf16 %v237_v13, %v236_v12 }
  0x13   :  { %v269_v15 = vld [vmem:[%s843_s3 + $0x1e8] sm:$0xff]  ;;  %v575_v17 = vpack.c.bf16 %v251_v11, %v250_v10  ;;  %v220_v20 = vld [vmem:[%s843_s3 + $0x60] sm:$0xff]  ;;  %v238_v26 = vld [vmem:[%s843_s3 + $0xf0] sm:$0xff] }
  0x14   :  { %536 = vmatpush3.bf16.msra.mxu0 %v535_v56  ;;  %v577_v19 = vpack.c.bf16 %v269_v15, %v268_v14  ;;  %v221_v21 = vld [vmem:[%s843_s3 + $0x68] sm:$0xff]  ;;  %v252_v22 = vld [vmem:[%s843_s3 + $0x160] sm:$0xff]  ;;  %v239_v27 = vld [vmem:[%s843_s3 + $0xf8] sm:$0xff] }
  0x15   :  { %568 = vmatpush3.bf16.msra.mxu1 %v567_v57  ;;  %538 = vmatprep.subr.bf16.mxu0 %v537_v60  ;;  %v547_v23 = vpack.c.bf16 %v221_v21, %v220_v20  ;;  %v253_v24 = vld [vmem:[%s843_s3 + $0x168] sm:$0xff]  ;;  %v270_v28 = vld [vmem:[%s843_s3 + $0x1f0] sm:$0xff]  ;;  %v549_v29 = vpack.c.bf16 %v239_v27, %v238_v26  ;;  %v271_v30 = vld [vmem:[%s843_s3 + $0x1f8] sm:$0xff] }
  0x16   :  { %570 = vmatprep.subr.bf16.mxu1 %v569_v61  ;;  %v579_v25 = vpack.c.bf16 %v253_v24, %v252_v22  ;;  %v222_v31 = vld [vmem:[%s843_s3 + $0x70] sm:$0xff]  ;;  %v223_v32 = vld [vmem:[%s843_s3 + $0x78] sm:$0xff]  ;;  %v581_v33 = vpack.c.bf16 %v271_v30, %v270_v28  ;;  %v23_v42 = vld [vmem:[%s844_s2] sm:$0xf] }
  0x17   :  { %v551_v34 = vpack.c.bf16 %v223_v32, %v222_v31  ;;  %v254_v35 = vld [vmem:[%s843_s3 + $0x170] sm:$0xff]  ;;  %v255_v36 = vld [vmem:[%s843_s3 + $0x178] sm:$0xff]  ;;  %v28_v45 = vrot.slane %v23_v42, %v27_v40  ;;  %v36_v46 = vrot.slane %v23_v42, %v35_v41  ;;  %v32_v47 = vrot.slane %v23_v42, %v31_v43  ;;  %v450_v63 = vld [vmem:[%s845_s4] ss:$0 sm:$0xff] }
  0x18   :  { %540 = vmatpush3.bf16.msra.mxu0 %v539_v4  ;;  %v583_v37 = vpack.c.bf16 %v255_v36, %v254_v35  ;;  %v40_v48 = vrot.slane %v23_v42, %v39_v44 }
  0x19   :  { %572 = vmatpush3.bf16.msra.mxu1 %v571_v5  ;;  %542 = vmatprep.subr.bf16.mxu0 %v541_v8 }
  0x1a   :  { %574 = vmatprep.subr.bf16.mxu1 %v573_v9 }
  0x1c   :  { %544 = vmatpush3.bf16.msra.mxu0 %v543_v16 }
  0x1d   :  { %576 = vmatpush3.bf16.msra.mxu1 %v575_v17  ;;  %546 = vmatprep.subr.bf16.mxu0 %v545_v18 }
  0x1e   :  { %578 = vmatprep.subr.bf16.mxu1 %v577_v19 }
  0x20   :  { %548 = vmatpush3.bf16.msra.mxu0 %v547_v23 }
  0x21   :  { %580 = vmatpush3.bf16.msra.mxu1 %v579_v25  ;;  %550 = vmatprep.subr.bf16.mxu0 %v549_v29 }
  0x22   :  { %582 = vmatprep.subr.bf16.mxu1 %v581_v33 }
  0x24   :  { %552 = vmatpush3.bf16.msra.mxu0 %v551_v34 }
  0x25   :  { %584 = vmatpush3.bf16.msra.mxu1 %v583_v37 }
  0xd9   :  { %v128_v49 = vpop.f32.mrb[0].mxu0  ;;  %v199_v50 = vpop.f32.mrb[0].mxu1 }
  0xda   :  { %v129_v51 = vadd.f32 %v128_v49, %v28_v45  ;;  %v200_v52 = vadd.f32 %v199_v50, %v36_v46  ;;  %v130_v53 = vpop.f32.mrb[1].mxu0  ;;  %v201_v54 = vpop.f32.mrb[1].mxu1 }
  0xdb   :  { %v131_v55 = vadd.f32 %v130_v53, %v32_v47  ;;  %v202_v56 = vadd.f32 %v201_v54, %v40_v48 }
  0xdc   :  { %v206_v57 = vmax.f32 %v200_v52, 0.0  ;;  %v204_v60 = vmax.f32 %v129_v51, 0.0 }
  0xdd   :  { %v205_v58 = vmax.f32 %v131_v55, 0.0  ;;  %v207_v59 = vmax.f32 %v202_v56, 0.0 }
  0xdf   :  { %343 = vmatprep.mubr.f32.mxu0 %v205_v58  ;;  %413 = vmatprep.mubr.f32.mxu1 %v207_v59 }
  0xe0   :  { %344 = vmatmul.mubr.f32.vlgmr.msra.gmra.mrb[2].mxu0 %v204_v60  ;;  %414 = vmatmul.mubr.f32.vlgmr.msra.gmra.mrb[2].mxu1 %v206_v57 }
 0x1b3   :  { %v483_v61 = vpop.f32.mrb[2].mxu0  ;;  %v518_v62 = vpop.f32.mrb[2].mxu1 }
 0x1b4   :  { %v484_v0 = vpop.f32.mrb[3].mxu0  ;;  %v519_v1 = vpop.f32.mrb[3].mxu1 }
 0x1b5   :  { %v485_v2 = vadd.f32 %v484_v0, %v483_v61  ;;  %v520_v3 = vadd.f32 %v519_v1, %v518_v62 }
 0x1b7   :  { %v346_v4 = vadd.f32 %v485_v2, %v450_v63 }
 0x1b9   :  { %v416_v5 = vadd.f32 %v520_v3, %v346_v4 }
 0x1bb   :  { %v420_v6 = vsel %vm419_vm2, %v416_v5, -inf }
 0x1bc   :  { %421 = vmax.xlane.f32.xlu0 %v420_v6 }
 0x249   :  { %v422_v7 = vpop.xlane.xlu0 %421 }
 0x24a   :  { %v423_v8 = vsub.f32 %v416_v5, %v422_v7 }
 0x24c   :  { %v424_v9 = vmul.f32 1.442695, %v423_v8 }
 0x24e   :  { %589 = vpow2.f32 %v424_v9 }
 0x258   :  { %v590_v10 = vpop.eup %589 }
 0x259   :  { %427 = vrot.lane.b32.xlu0 %v590_v10, %s594_s19 }
 0x2cb   :  { %v428_v11 = vpop.permute.xlu0 %427 }
 0x2cc   :  { %v431_v12 = vsel %vm430_vm3, %v428_v11, 0.0 }
 0x2cd   :  { %432 = vadd.xlane.f32.xlu1 %v431_v12 }
 0x35a   :  { %v433_v13 = vpop.xlane.xlu1 %432 }
 0x35b   :  { %591 = vrcp.f32 %v433_v13 }
 0x365   :  { %v592_v14 = vpop.eup %591 }
 0x366   :  { %v435_v15 = vmul.f32 %v592_v14, %v590_v10 }
 0x368   :  { %v437_v16 = vsel %vm436_vm4, %v416_v5, %v435_v15 }
 0x369   :  { %439 = vst.msk [vmem:[%s846_s5] sm:$0xff] %vm438_vm5, %v437_v16 }

</bundles_post_ra>
